<compile_context>
chip_gen: v5e
topology: v5e:2x2
jax: 0.10.0
libtpu: 0.0.40
codegen_flags: <defaults>
</compile_context>

<pallas_src>
import functools

import jax
import jax.numpy as jnp
from jax.experimental import pallas as pl
from jax.experimental.pallas import tpu as pltpu


# Logical model dims (match the PyTorch config)
D_IN, D_HID, D_OUT = 32, 64, 16
# Hidden width padded to a lane-dense 128 inside the kernel (never hits HBM)
D_HID_P = 128

COMPUTE_DTYPE = jnp.bfloat16  # matmul operands; accumulation stays f32


def _round_up(x, m):
    return ((x + m - 1) // m) * m


def _pad2(a, rows, cols):
    return jnp.pad(a, ((0, rows - a.shape[0]), (0, cols - a.shape[1])))


# ----------------------------- Pallas kernel ------------------------------- #
def _mlp_kernel(x_ref, w1_ref, b1_ref, w2_ref, b2_ref, w3_ref, b3_ref, o_ref):
    # x arrives at its logical 32 lanes in f32; down-cast to bf16 only for the
    # MXU.  Bias add + ReLU stay in f32 (close to the f32 PyTorch module).
    x = x_ref[...].astype(w1_ref.dtype)
    # Layer 1: Linear + ReLU
    h = jnp.dot(x, w1_ref[...], preferred_element_type=jnp.float32)
    h = jnp.maximum(h + b1_ref[...], 0.0)
    # Layer 2: Linear + ReLU
    h = jnp.dot(h.astype(w2_ref.dtype), w2_ref[...],
                preferred_element_type=jnp.float32)
    h = jnp.maximum(h + b2_ref[...], 0.0)
    # Layer 3: Linear (output head, no activation) — only 16 logical columns
    h = jnp.dot(h.astype(w3_ref.dtype), w3_ref[...],
                preferred_element_type=jnp.float32)
    o_ref[...] = (h + b3_ref[...]).astype(o_ref.dtype)


# ------------------------- One-time param prep ------------------------------ #
def prepare_params(params):
    """Pad hidden dims to 128 and cast weights to bf16 ONCE (off the fwd path).

    Zero-padding weights AND biases keeps padded hidden units exactly 0 through
    ReLU, so the math is identical to the logical 32->64->64->16 MLP.
    """
    return {
        "w1": _pad2(params["w1"], D_IN, D_HID_P).astype(COMPUTE_DTYPE),      # (32, 128)
        "b1": _pad2(params["b1"], 1, D_HID_P),                               # (1, 128) f32
        "w2": _pad2(params["w2"], D_HID_P, D_HID_P).astype(COMPUTE_DTYPE),   # (128, 128)
        "b2": _pad2(params["b2"], 1, D_HID_P),                               # (1, 128) f32
        "w3": _pad2(params["w3"], D_HID_P, D_OUT).astype(COMPUTE_DTYPE),     # (128, 16)
        "b3": params["b3"],                                                  # (1, 16)  f32
    }


def _pick_tile(B, tb_cap):
    # >=4 grid steps when the batch allows (lets v7x shard across its 2 TCs),
    # tile rows a multiple of 8 sublanes, capped to amortize per-step overhead.
    tb = _round_up(max(-(-B // 4), 1), 8)
    return max(8, min(tb_cap, tb))


# ------------------------------ Forward ------------------------------------- #
@functools.partial(jax.jit, static_argnames=("tb_cap",))
def neural_network_forward(x, pparams, *, tb_cap=1024):
    """Fused MLP forward.

    x: (B, 32) float32.  pparams: output of `prepare_params` (padded/bf16).
    Returns (B, 16) float32.
    """
    B = x.shape[0]
    tb = _pick_tile(B, tb_cap)
    Bp = _round_up(B, tb)
    grid = (Bp // tb,)

    # Only pad the batch when needed; feature dims stay at their logical width.
    xp = x if Bp == B else jnp.pad(x, ((0, Bp - B), (0, 0)))

    # Resident specs: same block every grid step (DMA'd once, kept in VMEM).
    resident = lambda shape: pl.BlockSpec(shape, lambda i: (0, 0))

    flops = 2 * B * (D_IN * D_HID_P + D_HID_P * D_HID_P + D_HID_P * D_OUT)
    bytes_accessed = (
        xp.size * xp.dtype.itemsize                                  # input
        + Bp * D_OUT * 4                                             # output
        + sum(a.size * a.dtype.itemsize for a in pparams.values())   # params
    )

    out = pl.pallas_call(
        _mlp_kernel,
        out_shape=jax.ShapeDtypeStruct((Bp, D_OUT), jnp.float32),
        grid=grid,
        in_specs=[
            pl.BlockSpec((tb, D_IN), lambda i: (i, 0)),  # x: batch-tiled, 32 lanes
            resident((D_IN, D_HID_P)),                   # w1
            resident((1, D_HID_P)),                      # b1
            resident((D_HID_P, D_HID_P)),                # w2
            resident((1, D_HID_P)),                      # b2
            resident((D_HID_P, D_OUT)),                  # w3
            resident((1, D_OUT)),                        # b3
        ],
        out_specs=pl.BlockSpec((tb, D_OUT), lambda i: (i, 0)),
        compiler_params=pltpu.CompilerParams(
            dimension_semantics=("parallel",)),
        cost_estimate=pl.CostEstimate(
            flops=flops, transcendentals=0, bytes_accessed=bytes_accessed),
    )(xp, pparams["w1"], pparams["b1"], pparams["w2"], pparams["b2"],
      pparams["w3"], pparams["b3"])

    return out if Bp == B else out[:B]


# -------------------------- Parameter init --------------------------------- #
def init_params(key, d_in=D_IN, d_hidden=D_HID, d_out=D_OUT):
    """Deterministic init mimicking nn.Linear's uniform(-1/sqrt(fan_in), ...)."""
    ks = jax.random.split(key, 6)

    def lin(kw, kb, fan_in, fan_out):
        bound = 1.0 / jnp.sqrt(fan_in)
        # stored as (in, out) so the kernel does x @ W
        w = jax.random.uniform(kw, (fan_in, fan_out), jnp.float32, -bound, bound)
        b = jax.random.uniform(kb, (1, fan_out), jnp.float32, -bound, bound)
        return w, b

    w1, b1 = lin(ks[0], ks[1], d_in, d_hidden)
    w2, b2 = lin(ks[2], ks[3], d_hidden, d_hidden)
    w3, b3 = lin(ks[4], ks[5], d_hidden, d_out)
    return {"w1": w1, "b1": b1, "w2": w2, "b2": b2, "w3": w3, "b3": b3}


# ---------------------------- References ------------------------------------ #
def reference_forward_f32(x, p):
    h = jnp.maximum(x @ p["w1"] + p["b1"], 0.0)
    h = jnp.maximum(h @ p["w2"] + p["b2"], 0.0)
    return h @ p["w3"] + p["b3"]


def reference_forward_matched(x, p):
    """Mimics the kernel's precision: bf16 matmul operands, f32 accumulate."""
    def lin(h, w, b):
        hf = h.astype(COMPUTE_DTYPE).astype(jnp.float32)
        wf = w.astype(COMPUTE_DTYPE).astype(jnp.float32)
        return jnp.dot(hf, wf) + b
    h = jnp.maximum(lin(x, p["w1"], p["b1"]), 0.0)
    h = jnp.maximum(lin(h, p["w2"], p["b2"]), 0.0)
    return lin(h, p["w3"], p["b3"])


if __name__ == "__main__":
    key = jax.random.PRNGKey(0)
    k_x, k_p = jax.random.split(key)

    # Small deterministic example: batch=16 -> tile=8 rows -> 2 grid steps.
    B = 16
    x = jax.random.normal(k_x, (B, D_IN), jnp.float32)
    params = init_params(k_p, D_IN, D_HID, D_OUT)
    pparams = prepare_params(params)  # one-time pad + bf16 cast (off fwd path)

    out = neural_network_forward(x, pparams)
    out = jax.block_until_ready(out)
    assert out.shape == (B, D_OUT)

    ref_matched = reference_forward_matched(x, params)
    ref_f32 = reference_forward_f32(x, params)
    assert jnp.allclose(out, ref_matched, atol=2e-3, rtol=2e-3), \
        "mismatch vs precision-matched reference"
    assert jnp.allclose(out, ref_f32, atol=1e-1, rtol=1e-1), \
        "mismatch vs f32 reference"

    print("KERNEL_OK")
</pallas_src>

<mosaic_0001>
module attributes {stable_mosaic.version = 11 : i64} {
  func.func @_mlp_kernel(%arg0: i32, %arg1: memref<8x32xf32, #tpu.memory_space<vmem>>, %arg2: memref<32x128xbf16, #tpu.memory_space<vmem>>, %arg3: memref<1x128xf32, #tpu.memory_space<vmem>>, %arg4: memref<128x128xbf16, #tpu.memory_space<vmem>>, %arg5: memref<1x128xf32, #tpu.memory_space<vmem>>, %arg6: memref<128x16xbf16, #tpu.memory_space<vmem>>, %arg7: memref<1x16xf32, #tpu.memory_space<vmem>>, %arg8: memref<8x16xf32, #tpu.memory_space<vmem>>) attributes {dimension_semantics = [#tpu.dimension_semantics<parallel>], iteration_bounds = array<i64: 2>, scalar_prefetch = 0 : i64, scratch_operands = 0 : i64, tpu.core_type = #tpu.core_type<tc>, window_params = [{transform_indices = @transform_0, window_bounds = array<i64: 8, 32>}, {pipeline_mode = #tpu.pipeline_mode<synchronous>, transform_indices = @transform_1, window_bounds = array<i64: 32, 128>}, {pipeline_mode = #tpu.pipeline_mode<synchronous>, transform_indices = @transform_2, window_bounds = array<i64: 1, 128>}, {pipeline_mode = #tpu.pipeline_mode<synchronous>, transform_indices = @transform_3, window_bounds = array<i64: 128, 128>}, {pipeline_mode = #tpu.pipeline_mode<synchronous>, transform_indices = @transform_4, window_bounds = array<i64: 1, 128>}, {pipeline_mode = #tpu.pipeline_mode<synchronous>, transform_indices = @transform_5, window_bounds = array<i64: 128, 16>}, {pipeline_mode = #tpu.pipeline_mode<synchronous>, transform_indices = @transform_6, window_bounds = array<i64: 1, 16>}, {transform_indices = @transform_7, window_bounds = array<i64: 8, 16>}]} {
    %c0 = arith.constant 0 : index
    %c0_0 = arith.constant 0 : index
    %0 = vector.load %arg1[%c0, %c0_0] : memref<8x32xf32, #tpu.memory_space<vmem>>, vector<8x32xf32>
    %1 = arith.truncf %0 : vector<8x32xf32> to vector<8x32xbf16>
    %c0_1 = arith.constant 0 : index
    %c0_2 = arith.constant 0 : index
    %2 = vector.load %arg2[%c0_1, %c0_2] : memref<32x128xbf16, #tpu.memory_space<vmem>>, vector<32x128xbf16>
    %cst = arith.constant dense<0.000000e+00> : vector<8x128xf32>
    %3 = tpu.matmul %1, %2, %cst {dimension_numbers = #tpu.dot_dimension_numbers<[1], [0], [0], [1], [0, 0, 1, 1], [], []>} : vector<8x32xbf16>, vector<32x128xbf16>, vector<8x128xf32> -> vector<8x128xf32>
    %c0_3 = arith.constant 0 : index
    %c0_4 = arith.constant 0 : index
    %4 = vector.load %arg3[%c0_3, %c0_4] : memref<1x128xf32, #tpu.memory_space<vmem>>, vector<1x128xf32>
    %5 = vector.broadcast %4 : vector<1x128xf32> to vector<8x128xf32>
    %6 = arith.addf %3, %5 : vector<8x128xf32>
    %cst_5 = arith.constant 0.000000e+00 : f32
    %7 = vector.broadcast %cst_5 : f32 to vector<8x128xf32>
    %8 = arith.maximumf %6, %7 : vector<8x128xf32>
    %9 = arith.truncf %8 : vector<8x128xf32> to vector<8x128xbf16>
    %c0_6 = arith.constant 0 : index
    %c0_7 = arith.constant 0 : index
    %10 = vector.load %arg4[%c0_6, %c0_7] : memref<128x128xbf16, #tpu.memory_space<vmem>>, vector<128x128xbf16>
    %cst_8 = arith.constant dense<0.000000e+00> : vector<8x128xf32>
    %11 = tpu.matmul %9, %10, %cst_8 {dimension_numbers = #tpu.dot_dimension_numbers<[1], [0], [0], [1], [0, 0, 1, 1], [], []>} : vector<8x128xbf16>, vector<128x128xbf16>, vector<8x128xf32> -> vector<8x128xf32>
    %c0_9 = arith.constant 0 : index
    %c0_10 = arith.constant 0 : index
    %12 = vector.load %arg5[%c0_9, %c0_10] : memref<1x128xf32, #tpu.memory_space<vmem>>, vector<1x128xf32>
    %13 = vector.broadcast %12 : vector<1x128xf32> to vector<8x128xf32>
    %14 = arith.addf %11, %13 : vector<8x128xf32>
    %cst_11 = arith.constant 0.000000e+00 : f32
    %15 = vector.broadcast %cst_11 : f32 to vector<8x128xf32>
    %16 = arith.maximumf %14, %15 : vector<8x128xf32>
    %17 = arith.truncf %16 : vector<8x128xf32> to vector<8x128xbf16>
    %c0_12 = arith.constant 0 : index
    %c0_13 = arith.constant 0 : index
    %18 = vector.load %arg6[%c0_12, %c0_13] : memref<128x16xbf16, #tpu.memory_space<vmem>>, vector<128x16xbf16>
    %cst_14 = arith.constant dense<0.000000e+00> : vector<8x16xf32>
    %19 = tpu.matmul %17, %18, %cst_14 {dimension_numbers = #tpu.dot_dimension_numbers<[1], [0], [0], [1], [0, 0, 1, 1], [], []>} : vector<8x128xbf16>, vector<128x16xbf16>, vector<8x16xf32> -> vector<8x16xf32>
    %c0_15 = arith.constant 0 : index
    %c0_16 = arith.constant 0 : index
    %20 = vector.load %arg7[%c0_15, %c0_16] : memref<1x16xf32, #tpu.memory_space<vmem>>, vector<1x16xf32>
    %21 = vector.broadcast %20 : vector<1x16xf32> to vector<8x16xf32>
    %22 = arith.addf %19, %21 : vector<8x16xf32>
    %c0_17 = arith.constant 0 : index
    %c0_18 = arith.constant 0 : index
    %23 = vector.load %arg8[%c0_17, %c0_18] : memref<8x16xf32, #tpu.memory_space<vmem>>, vector<8x16xf32>
    tpu.vector_store %arg8[%c0_17, %c0_18], %22 {strides = array<i32>} : memref<8x16xf32, #tpu.memory_space<vmem>>, vector<8x16xf32>,
    return
  }
  func.func @transform_0(%arg0: i32) -> (i32, i32) {
    %c0_i32 = arith.constant 0 : i32
    %c0_i32_0 = arith.constant 0 : i32
    return %arg0, %c0_i32 : i32, i32
  }
  func.func @transform_1(%arg0: i32) -> (i32, i32) {
    %c0_i32 = arith.constant 0 : i32
    %c0_i32_0 = arith.constant 0 : i32
    %c0_i32_1 = arith.constant 0 : i32
    return %c0_i32, %c0_i32_0 : i32, i32
  }
  func.func @transform_2(%arg0: i32) -> (i32, i32) {
    %c0_i32 = arith.constant 0 : i32
    %c0_i32_0 = arith.constant 0 : i32
    %c0_i32_1 = arith.constant 0 : i32
    return %c0_i32, %c0_i32_0 : i32, i32
  }
  func.func @transform_3(%arg0: i32) -> (i32, i32) {
    %c0_i32 = arith.constant 0 : i32
    %c0_i32_0 = arith.constant 0 : i32
    %c0_i32_1 = arith.constant 0 : i32
    return %c0_i32, %c0_i32_0 : i32, i32
  }
  func.func @transform_4(%arg0: i32) -> (i32, i32) {
    %c0_i32 = arith.constant 0 : i32
    %c0_i32_0 = arith.constant 0 : i32
    %c0_i32_1 = arith.constant 0 : i32
    return %c0_i32, %c0_i32_0 : i32, i32
  }
  func.func @transform_5(%arg0: i32) -> (i32, i32) {
    %c0_i32 = arith.constant 0 : i32
    %c0_i32_0 = arith.constant 0 : i32
    %c0_i32_1 = arith.constant 0 : i32
    return %c0_i32, %c0_i32_0 : i32, i32
  }
  func.func @transform_6(%arg0: i32) -> (i32, i32) {
    %c0_i32 = arith.constant 0 : i32
    %c0_i32_0 = arith.constant 0 : i32
    %c0_i32_1 = arith.constant 0 : i32
    return %c0_i32, %c0_i32_0 : i32, i32
  }
  func.func @transform_7(%arg0: i32) -> (i32, i32) {
    %c0_i32 = arith.constant 0 : i32
    %c0_i32_0 = arith.constant 0 : i32
    return %arg0, %c0_i32 : i32, i32
  }
}

</mosaic_0001>

<bundles_post_ra>
// kernel: neural_network_forward.1
= control target key start
LH: loop header
LB: loop body
LE: loop exit
PB: predicated region body
PF: predicated region fallthrough
CT: control target
= control target key end

     0   :  { %s1156_s0 = inlined_call_operand.hbm [shape: f32[16,32], index: 0, kind: input, shape index: {}]   ;;  %s1157_s1 = inlined_call_operand.hbm [shape: bf16[32,128], index: 1, kind: input, shape index: {}]   ;;  %s1158_s2 = inlined_call_operand.vmem [shape: f32[1,128], index: 2, kind: input, shape index: {}]   ;;  %s1159_s3 = inlined_call_operand.vmem [shape: bf16[128,128], index: 3, kind: input, shape index: {}]   ;;  %s1160_s4 = inlined_call_operand.vmem [shape: f32[1,128], index: 4, kind: input, shape index: {}]   ;;  %s1161_s5 = inlined_call_operand.vmem [shape: bf16[128,16], index: 5, kind: input, shape index: {}]   ;;  %s1162_s6 = inlined_call_operand.vmem [shape: f32[1,16], index: 6, kind: input, shape index: {}]   ;;  %s1163_s7 = inlined_call_operand.hbm [shape: f32[16,16], index: 7, kind: output, shape index: {}]  }
   0x1   :  { %1164 = sst [smem:[#allocation11_spill]] %s1157_s1 }
   0x2   :  { %12 = vsyncpa [#allocation3], 0 }
   0x3   :  { %14 = vsyncpa [#allocation3 + $0x1], 0 }
   0x4   :  { %15 = vsyncpa [#allocation6], 0 }
   0x5   :  { %16 = vsyncpa [#allocation4], 0 }
   0x6   :  { %18 = vsyncpa [#allocation4 + $0x1], 0  ;;  %s959_s24 = smov 0   ;;  %s961_s25 = smov 0  }
   0x7   :  { %s963_s26 = smov 0   ;;  %s965_s27 = smov 0  }
   0x8 LB: > { %s1165_s1 = sld [smem:[#allocation11_spill]]  ;;  %s983_s8 = sadd.s32 4294967295, %s914_s27   ;;  %s914_s27 = sphi %s965_s27, %s1175_s27   ;;  %s910_s26 = sphi %s963_s26, %s1174_s26   ;;  %s906_s25 = sphi %s961_s25, %s1173_s25   ;;  %s902_s24 = sphi %s959_s24, %s1172_s24  }
   0x9   : > { %p618_p0 = scmp.ge.s32.totalorder %s914_s27, 1  ;;  %p45_p1 = scmp.eq.s32.totalorder %s983_s8, 0 }
   0xa   : > { %p207_p2 = scmp.lt.s32.totalorder %s914_s27, 3  ;;  %s916_s10 = smov [#allocation5]  }
   0xb   : > { %s220_s11 = sshll.u32 %s916_s10, 4  ;;  %s917_s12 = smov 64   ;;  %s221_s11 = int_to_ptr.vmem [resolvable:$true] %s220_s11 }
   0xc   : > { %p988_p3 = pnand %p618_p0, %p207_p2  ;;  %s918_s13 = smov 4  }
   0xd   : > { %s617_s14 = sadd.s32 4294967294, %s914_s27   ;;  %s999_s15 = sadd.s32 1, %s914_s27  }
   0xe   : > { %s218_s30 = sshll.u32 %s1165_s1, 4  ;;  %p730_p4 = pneg %p988_p3  ;;  %s219_s30 = int_to_ptr.hbm [resolvable:$true] %s218_s30 }
   0xf   : > { %s31_s16 = sadd.s32 1, %s910_s26  ;;  %s28_s17 = ssub.s32 %s914_s27, %s999_s15 }
  0x10   : > { %p731_p6 = pnand %p730_p4, %p45_p1  ;;  %p38_p7 = scmp.ne.s32.totalorder %s910_s26, %s906_s25 }
  0x11   : > { %p29_p8 = scmp.eq.s32.totalorder %s28_s17, 0  ;;  %p39_p9 = scmp.eq.s32.totalorder %s914_s27, 0 }
  0x12   : > { %733 = dma.hbm_to_vmem [thread:$0]  (!%p731_p6), %s219_s30, 256, %s221_s11, [#allocation6], %s917_s12, %s917_s12, %s918_s13  }
  0x13   : > { %p44_p10 = scmp.ne.s32.totalorder %s906_s25, %s902_s24  ;;  %p194_p11 = scmp.eq.s32.totalorder %s983_s8, 1 }
  0x14   : > { %s1011_s18 = scalar_select %p29_p8, %s910_s26, %s31_s16  }
  0x15   : > { %p1015_p12 = por %p45_p1, %p44_p10  ;;  %p1019_p13 = por %p194_p11, %p38_p7 }
  0x16   : > { %p200_p0 = scmp.eq.s32.totalorder %s617_s14, 1  ;;  %p40_p2 = por %p39_p9, %p38_p7 }
  0x17   : > { %s249_s21 = sand.u32 1, %s910_s26   ;;  %p743_p6 = scmp.lt.s32.totalorder %s914_s27, 2 }
  0x18   : > { %p1024_p4 = por %p200_p0, %p44_p10  ;;  %s621_s23 = sshll.u32 %s249_s21, 3 }
  0x19   : > { %s622_s28 = sshll.u32 %s914_s27, 3  ;;  %s253_s12 = scalar_lea.vmem [#allocation2], %s621_s23 }
  0x1a   : > { %s257_s10 = scalar_lea.hbm %s1156_s0, %s622_s28  ;;  %s261_s13 = sshll.u32 %s253_s12, 4  ;;  %s262_s13 = int_to_ptr.vmem [resolvable:$true] %s261_s13 }
  0x1b   : > { %s259_s11 = sshll.u32 %s257_s10, 4  ;;  %p1033_p8 = pnand %p743_p6, %p40_p2  ;;  %s260_s11 = int_to_ptr.hbm [resolvable:$true] %s259_s11 }
  0x1c   : > { %s250_s16 = scalar_lea.sflag [#allocation3], %s249_s21  ;;  %s814_s17 = sshra.s32 %s260_s11, 4  ;;  %s815_s17 = int_to_ptr.hbm [resolvable:$true] %s814_s17 }
  0x1d   : > { %s816_s1 = scalar_lea.hbm %s815_s17, 8  ;;  %p818_p9 = pneg %p1033_p8 }
  0x1e   : > { %p817_p7 = scmp.ne.s32.totalorder %s815_s17, %s816_s1  ;;  %s821_s23 = scalar_lea.hbm %s1156_s0, 16 }
  0x1f   : > { %p822_p0 = scmp.lt.s32.totalorder %s815_s17, %s1156_s0  ;;  %p823_p2 = scmp.lt.s32.totalorder %s821_s23, %s816_s1 }
  0x20   : > { %p819_p10 = pnand %p818_p9, %p817_p7 }
  0x21   : > { %p824_p6 = por %p823_p2, %p822_p0 }
  0x22   : > { %p820_p11 = pneg %p819_p10 }
  0x24   : > { %p825_p5 = pnand %p824_p6, %p820_p11 }
  0x26   : > { %828 = shalt.err (!%p825_p5)
}
  0x27   : > { %737 = dma.hbm_to_vmem [thread:$0]  (!%p1033_p8), %s260_s11, 128, %s262_s13, %s250_s16  }
  0x28   : > { %270 = sbr.rel (%p988_p3) target bundleno = 460 (0x1cc), region = 48  ;;  %s1050_s21 = sand.u32 (!%p988_p3), 1, %s906_s25  }
  0x29   : > { %s624_s12 = sshll.u32 (!%p988_p3), %s1050_s21, 3  ;;  %s273_s28 = scalar_lea.sflag (!%p988_p3), [#allocation3], %s1050_s21 }
  0x2a   : > { %s276_s1 = scalar_lea.vmem (!%p988_p3), [#allocation2], %s624_s12 }
  0x2d   : > { %889 = dma.done.wait (%p1015_p12), %s273_s28, 128  }
  0x2e   : > { %891 = vsyncadd (%p1015_p12), %s273_s28, 4294967168 }
  0x2f   : > { %893 = dma.done.wait (%p45_p1), [#allocation6], 256  }
  0x30   : > { %895 = vsyncadd (%p45_p1), [#allocation6], 4294967040  ;;  %v705_v0 = vld [vmem:[#allocation5 + $0x8] sm:$0xff]  ;;  %v704_v2 = vld [vmem:[#allocation5] sm:$0xff]  ;;  %vm336_vm0 = vcmask 261120   ;;  %s701_s10 = sshll.u32 %s983_s8, 3 }
  0x31   : > { %v713_v1 = vld [vmem:[%s1159_s3 + $0x38] sm:$0xff]  ;;  %346 = vmatpush.bf16.msra.mxu0 %v705_v0  ;;  %v314_v3 = vld [vmem:[%s276_s1] sm:$0xff]  ;;  %v712_v4 = vld [vmem:[%s1159_s3 + $0x30] sm:$0xff]  ;;  %s532_s9 = scalar_lea.hbm %s1163_s7, %s701_s10  ;;  %s312_s14 = scalar_lea.vmem [#allocation7], %s624_s12  ;;  %vm519_vm1 = vcmask 130048  }
  0x32   : > { %423 = vmatpush.bf16.msra.mxu1 %v713_v1  ;;  %v315_v5 = vpack.c.bf16 %v314_v3, %v314_v3  ;;  %v711_v6 = vld [vmem:[%s1159_s3 + $0x28] sm:$0xff]  ;;  %v710_v7 = vld [vmem:[%s1159_s3 + $0x20] sm:$0xff]  ;;  %v709_v8 = vld [vmem:[%s1159_s3 + $0x18] sm:$0xff]  ;;  %s534_s19 = sshll.u32 %s312_s14, 4  ;;  %s536_s16 = sshll.u32 %s532_s9, 4  ;;  %s535_s19 = int_to_ptr.vmem [resolvable:$true] %s534_s19  ;;  %s537_s16 = int_to_ptr.hbm [resolvable:$true] %s536_s16 }
  0x33   : > { %v708_v9 = vld [vmem:[%s1159_s3 + $0x10] sm:$0xff]  ;;  %v707_v10 = vld [vmem:[%s1159_s3 + $0x8] sm:$0xff]  ;;  %v706_v11 = vld [vmem:[%s1159_s3] sm:$0xff]  ;;  %s522_s8 = scalar_lea.sflag [#allocation4], %s1050_s21  ;;  %s858_s17 = sshra.s32 %s537_s16, 4  ;;  %s859_s17 = int_to_ptr.hbm [resolvable:$true] %s858_s17 }
  0x34   : > { %v721_v12 = vld [vmem:[%s1161_s5 + $0x38] sm:$0xff]  ;;  %v720_v13 = vld [vmem:[%s1161_s5 + $0x30] sm:$0xff]  ;;  %v719_v14 = vld [vmem:[%s1161_s5 + $0x28] sm:$0xff]  ;;  %s860_s29 = scalar_lea.hbm %s859_s17, 8  ;;  %s864_s12 = scalar_lea.hbm %s1163_s7, 16 }
  0x35   : > { %347 = vmatpush.bf16.msra.mxu0 %v704_v2  ;;  %506 = vmatpush.bf16.msra.mxu2 %v721_v12  ;;  %v718_v15 = vld [vmem:[%s1161_s5 + $0x20] sm:$0xff]  ;;  %v717_v16 = vld [vmem:[%s1161_s5 + $0x18] sm:$0xff]  ;;  %v716_v17 = vld [vmem:[%s1161_s5 + $0x10] sm:$0xff]  ;;  %p861_p1 = scmp.ne.s32.totalorder %s859_s17, %s860_s29  ;;  %p865_p12 = scmp.lt.s32.totalorder %s859_s17, %s1163_s7 }
  0x36   : > { %424 = vmatpush.bf16.msra.mxu1 %v712_v4  ;;  %v781_v18 = vld [vmem:[%s1158_s2] ss:$0 sm:$0xff]  ;;  %v715_v24 = vld [vmem:[%s1161_s5 + $0x8] sm:$0xff]  ;;  %p866_p8 = scmp.lt.s32.totalorder %s864_s12, %s860_s29 }
  0x37   : > { %v714_v25 = vld [vmem:[%s1161_s5] sm:$0xff]  ;;  %p862_p3 = pnand %p861_p1, %p1019_p13 }
  0x38   : > { %635 = vmatmul.msk.bf16.vlgmr.msra.gmra.mxu0 %vm336_vm0, %v315_v5  ;;  %v782_v26 = vld [vmem:[%s1160_s4] ss:$0 sm:$0xff]  ;;  %p867_p7 = por %p866_p8, %p865_p12 }
  0x39   : > { %507 = vmatpush.bf16.msra.mxu2 %v720_v13  ;;  %v783_v32 = vld [vmem:[%s1162_s6] ss:$0 sm:$0xff]  ;;  %p863_p5 = pneg %p862_p3 }
  0x3a   : > { %425 = vmatpush.bf16.msra.mxu1 %v711_v6 }
  0x3b   : > { %p868_p9 = pnand %p867_p7, %p863_p5 }
  0x3d   : > { %508 = vmatpush.bf16.msra.mxu2 %v719_v14 }
  0x3e   : > { %426 = vmatpush.bf16.msra.mxu1 %v710_v7 }
  0x41   : > { %509 = vmatpush.bf16.msra.mxu2 %v718_v15 }
  0x42   : > { %427 = vmatpush.bf16.msra.mxu1 %v709_v8 }
  0x45   : > { %510 = vmatpush.bf16.msra.mxu2 %v717_v16 }
  0x46   : > { %428 = vmatpush.bf16.msra.mxu1 %v708_v9 }
  0x49   : > { %511 = vmatpush.bf16.msra.mxu2 %v716_v17 }
  0x4a   : > { %429 = vmatpush.bf16.msra.mxu1 %v707_v10 }
  0x4d   : > { %512 = vmatpush.bf16.msra.mxu2 %v715_v24 }
  0x4e   : > { %430 = vmatpush.bf16.msra.mxu1 %v706_v11 }
  0x51   : > { %513 = vmatpush.bf16.msra.mxu2 %v714_v25 }
  0xb5   : > { %v349_v19 = vpop.f32.mrf.mxu0 }
  0xb6   : > { %v350_v20 = vadd.f32 %v781_v18, %v349_v19 }
  0xb8   : > { %v353_v21 = vmax.f32 %v350_v20, 0.0 }
  0xba   : > { %v354_v22 = vpack.c.bf16 %v353_v21, %v353_v21 }
  0xbc   : > { %431 = vmatmul.bf16.vlgmr.msra.gmra.mxu1 %v354_v22 }
  0xbd   : > { %v351_v23 = vpop.f32.mrf.mxu0 }
 0x139   : > { %v432_v27 = vpop.f32.mrf.mxu1 }
 0x13a   : > { %v433_v28 = vadd.f32 %v782_v26, %v432_v27 }
 0x13c   : > { %v436_v29 = vmax.f32 %v433_v28, 0.0 }
 0x13e   : > { %v437_v30 = vpack.c.bf16 %v436_v29, %v436_v29 }
 0x140   : > { %514 = vmatmul.bf16.vlgmr.msra.gmra.mxu2 %v437_v30 }
 0x141   : > { %v434_v31 = vpop.f32.mrf.mxu1 }
 0x1c3   : > { %v515_v33 = vpop.f32.mrf.mxu2 }
 0x1c4   : > { %v516_v34 = vadd.f32 %v783_v32, %v515_v33 }
 0x1c6   : > { %520 = vst.msk [vmem:[%s312_s14] sm:$0xff] %vm519_vm1, %v516_v34 }
 0x1c7   : > { %871 = shalt.err (!%p868_p9)
}
 0x1c8   : > { %728 = dma.vmem_to_hbm [thread:$0]  (%p1019_p13), %s535_s19, 128, %s537_s16, %s522_s8  }
 0x1cb   : > { %v517_v35 = vpop.f32.mrf.mxu2 }
 0x1cc PF: > { %s548_s21 = sand.u32 1, %s902_s24   ;;  %p1171_p10 = scmp.ge.s32.totalorder %s914_s27, 2 }
 0x1cd   : > { %s549_s1 = scalar_lea.sflag [#allocation4], %s548_s21 }
 0x1ce   : > { %p739_p11 = pnand %p1171_p10, %p1024_p4 }
 0x1d0   : > { %p740_p0 = pneg %p739_p11 }
 0x1d2   : > { %897 = dma.done.wait (%p740_p0), %s549_s1, 128  }
 0x1d3   : > { %899 = vsyncadd (%p740_p0), %s549_s1, 4294967168  ;;  %p21_p2 = scmp.ge.s32.totalorder %s999_s15, 4   ;;  %s1172_s24 = smov %s906_s25 }
 0x1d4   : > { %s1173_s25 = smov %s910_s26  ;;  %s1174_s26 = smov %s1011_s18 }
 0x1d5   : > { %s1175_s27 = smov %s999_s15  ;;  %23 = sbr.rel (!%p21_p2) target bundleno = 8 (0x8), region = 97 }
 0x1da   :  { %555 = vsyncpa [#allocation3], 1 }
 0x1db   :  { %557 = vsyncpa [#allocation3 + $0x1], 1 }
 0x1dc   :  { %558 = vsyncpa [#allocation6], 1 }
 0x1dd   :  { %559 = vsyncpa [#allocation4], 1 }
 0x1de   :  { %561 = vsyncpa [#allocation4 + $0x1], 1 }

</bundles_post_ra>
